<compile_context>
chip_gen: v5e
topology: v5e:2x2
jax: 0.10.0
libtpu: 0.0.40
codegen_flags: <defaults>
</compile_context>

<pallas_src>
import functools

import jax
import jax.numpy as jnp
from jax import lax
from jax.experimental import pallas as pl
from jax.experimental.pallas import tpu as pltpu

_LANE = 128
_SUBLANE = 8


def _round_up(a: int, b: int) -> int:
    return (a + b - 1) // b * b


def _pick_tile_rows(total_rows: int, row_bytes: int,
                    target_tile_bytes: int = 1 << 20,
                    max_rows: int = 2048):
    """Pick a batch-tile row count (multiple of 8, ~target_tile_bytes)."""
    rows = (target_tile_bytes // max(row_bytes, 1)) // _SUBLANE * _SUBLANE
    rows = max(_SUBLANE, min(max_rows, rows))
    if total_rows <= rows:
        # Single full-extent tile (block dim == full array dim is allowed).
        return total_rows, total_rows
    return rows, _round_up(total_rows, rows)


def _gram_kernel(x_ref, m_ref, o_ref, *, post_scale: float):
    """One batch tile: relu(x @ M), M already has a non-negative scale folded in."""
    pre = jnp.dot(x_ref[...], m_ref[...], preferred_element_type=jnp.float32)
    y = jnp.maximum(pre, 0.0)
    if post_scale != 1.0:          # compile-time check; only negative scales
        y = y * jnp.float32(post_scale)
    o_ref[...] = y.astype(o_ref.dtype)


def _two_pass_kernel(x_ref, w_ref, o_ref, *, h_scale: float, post_scale: float):
    """Fallback when the Gram matrix would be too large: relu((x @ W^T) @ W)."""
    x = x_ref[...]
    w = w_ref[...]
    # h = x @ W^T  (contract last dims, no transpose materialized)
    h = lax.dot_general(x, w, dimension_numbers=(((1,), (1,)), ((), ())),
                        preferred_element_type=jnp.float32)
    if h_scale != 1.0:             # fold non-negative scale into narrow h
        h = h * jnp.float32(h_scale)
    pre = jnp.dot(h.astype(x.dtype), w, preferred_element_type=jnp.float32)
    y = jnp.maximum(pre, 0.0)
    if post_scale != 1.0:          # only used for negative scale factors
        y = y * jnp.float32(post_scale)
    o_ref[...] = y.astype(o_ref.dtype)


def toy_autoencoder_forward(x, embed_weight, *, scale_factor: float = 1.0,
                            force_two_pass: bool = False,
                            target_tile_bytes: int = 1 << 20):
    """Pallas forward of ToyAutoencoder (tied weights, no biases, relu).

    x:            (B, input_dim)
    embed_weight: (hidden_dim, input_dim)   (nn.Linear weight layout)
    """
    B, input_dim = x.shape
    hidden_dim, in_dim_w = embed_weight.shape
    assert in_dim_w == input_dim

    scale = float(scale_factor)
    bpe = jnp.dtype(x.dtype).itemsize
    out_dtype = x.dtype

    # relu(s*z) == s*relu(z) only for s >= 0; negative scales stay post-relu.
    fold_scale = scale if scale >= 0.0 else 1.0
    post_scale = 1.0 if scale >= 0.0 else scale

    gram_bytes = input_dim * input_dim * 4
    use_gram = (not force_two_pass) and gram_bytes <= (4 << 20)

    if use_gram:
        # M = W^T @ W in f32, scale folded in, then cast to the compute dtype
        # so bf16 inputs take the fast bf16 MXU path (accumulation stays f32).
        w32 = embed_weight.astype(jnp.float32)
        gram = jnp.dot(w32.T, w32, preferred_element_type=jnp.float32)
        if fold_scale != 1.0:
            gram = gram * jnp.float32(fold_scale)
        gram = gram.astype(x.dtype)

        # Lane-packing: view p consecutive batch rows as one 128-wide row.
        if input_dim < _LANE and _LANE % input_dim == 0:
            p = _LANE // input_dim
        else:
            p = 1
        width = p * input_dim
        if p > 1:
            gram = jnp.kron(jnp.eye(p, dtype=gram.dtype), gram)  # block-diag

        rows_needed = pl.cdiv(B, p)
        tb, rows_pad = _pick_tile_rows(rows_needed, width * bpe,
                                       target_tile_bytes)
        b_pad = rows_pad * p
        if b_pad != B:
            x = jnp.pad(x, ((0, b_pad - B), (0, 0)))
        x_packed = x.reshape(rows_pad, width)   # free row-major reshape

        grid = (rows_pad // tb,)
        vmem_need = 2 * 2 * tb * width * bpe + 2 * width * width * bpe
        kernel = functools.partial(_gram_kernel, post_scale=post_scale)
        cost = pl.CostEstimate(
            flops=2 * rows_pad * width * width,
            transcendentals=0,
            bytes_accessed=(2 * rows_pad * width + width * width) * bpe)

        out_packed = pl.pallas_call(
            kernel,
            out_shape=jax.ShapeDtypeStruct((rows_pad, width), out_dtype),
            grid_spec=pltpu.PrefetchScalarGridSpec(
                num_scalar_prefetch=0,
                grid=grid,
                in_specs=[
                    pl.BlockSpec((tb, width), lambda i: (i, 0)),
                    # Constant block: index_map -> (0, 0) every step, so the
                    # pipeline keeps it resident and never re-fetches it.
                    pl.BlockSpec((width, width), lambda i: (0, 0)),
                ],
                out_specs=pl.BlockSpec((tb, width), lambda i: (i, 0)),
            ),
            compiler_params=pltpu.CompilerParams(
                # "parallel" lets Mosaic shard grid steps across v7x's two
                # TensorCores; measured no-op on v5e/v6e.
                dimension_semantics=("parallel",),
                vmem_limit_bytes=int(min(max(2 * vmem_need, 16 << 20),
                                         32 << 20)),
            ),
            cost_estimate=cost,
        )(x_packed, gram)

        return out_packed.reshape(b_pad, input_dim)[:B]

    # ----- fallback: two MXU passes against the raw weight ------------------
    tb, b_pad = _pick_tile_rows(B, input_dim * bpe, target_tile_bytes)
    if b_pad != B:
        x = jnp.pad(x, ((0, b_pad - B), (0, 0)))
    grid = (b_pad // tb,)
    vmem_need = (2 * 2 * tb * input_dim * bpe
                 + 2 * hidden_dim * input_dim * bpe
                 + tb * hidden_dim * 4)
    kernel = functools.partial(_two_pass_kernel, h_scale=fold_scale,
                               post_scale=post_scale)
    cost = pl.CostEstimate(
        flops=4 * b_pad * hidden_dim * input_dim,
        transcendentals=0,
        bytes_accessed=(2 * b_pad * input_dim + hidden_dim * input_dim) * bpe)

    out = pl.pallas_call(
        kernel,
        out_shape=jax.ShapeDtypeStruct((b_pad, input_dim), out_dtype),
        grid_spec=pltpu.PrefetchScalarGridSpec(
            num_scalar_prefetch=0,
            grid=grid,
            in_specs=[
                pl.BlockSpec((tb, input_dim), lambda i: (i, 0)),
                pl.BlockSpec((hidden_dim, input_dim), lambda i: (0, 0)),
            ],
            out_specs=pl.BlockSpec((tb, input_dim), lambda i: (i, 0)),
        ),
        compiler_params=pltpu.CompilerParams(
            dimension_semantics=("parallel",),
            vmem_limit_bytes=int(min(max(2 * vmem_need, 16 << 20), 32 << 20)),
        ),
        cost_estimate=cost,
    )(x, embed_weight)
    return out[:B]


def toy_autoencoder_reference(x, embed_weight, scale_factor=1.0):
    h = x @ embed_weight.T
    pre = h @ embed_weight
    return scale_factor * jnp.maximum(pre, 0.0)


if __name__ == "__main__":
    input_dim, hidden_dim = 16, 8
    key = jax.random.PRNGKey(0)
    k_x, k_w, k_x2 = jax.random.split(key, 3)

    bound = 1.0 / float(input_dim) ** 0.5   # nn.Linear-style uniform init
    embed_weight = jax.random.uniform(
        k_w, (hidden_dim, input_dim), dtype=jnp.float32,
        minval=-bound, maxval=bound)

    # 1) Gram + lane-packed path, default scale_factor = 1.0.
    x1 = jax.random.normal(k_x, (64, input_dim), dtype=jnp.float32)
    out1 = jax.block_until_ready(toy_autoencoder_forward(x1, embed_weight))
    ref1 = toy_autoencoder_reference(x1, embed_weight)
    assert out1.shape == x1.shape
    assert jnp.allclose(out1, ref1, atol=1e-5, rtol=1e-4), "gram path mismatch"

    # 2) Ragged batch + folded non-unit scale factor.
    x2 = jax.random.normal(k_x2, (13, input_dim), dtype=jnp.float32)
    out2 = jax.block_until_ready(
        toy_autoencoder_forward(x2, embed_weight, scale_factor=0.5))
    ref2 = toy_autoencoder_reference(x2, embed_weight, 0.5)
    assert out2.shape == x2.shape
    assert jnp.allclose(out2, ref2, atol=1e-5, rtol=1e-4), "ragged/scale mismatch"

    # 3) Two-pass fallback kernel (used when the Gram matrix would be too big).
    out3 = jax.block_until_ready(
        toy_autoencoder_forward(x1, embed_weight, force_two_pass=True))
    assert jnp.allclose(out3, ref1, atol=1e-5, rtol=1e-4), "two-pass mismatch"

    print("KERNEL_OK")
</pallas_src>

<mosaic_0001>
module attributes {stable_mosaic.version = 11 : i64} {
  func.func @_gram_kernel(%arg0: i32, %arg1: memref<8x128xf32, #tpu.memory_space<vmem>>, %arg2: memref<128x128xf32, #tpu.memory_space<vmem>>, %arg3: memref<8x128xf32, #tpu.memory_space<vmem>>) attributes {dimension_semantics = [#tpu.dimension_semantics<parallel>], iteration_bounds = array<i64: 1>, scalar_prefetch = 0 : i64, scratch_operands = 0 : i64, tpu.core_type = #tpu.core_type<tc>, window_params = [{transform_indices = @transform_0, window_bounds = array<i64: 8, 128>}, {pipeline_mode = #tpu.pipeline_mode<synchronous>, transform_indices = @transform_1, window_bounds = array<i64: 128, 128>}, {transform_indices = @transform_2, window_bounds = array<i64: 8, 128>}]} {
    %c0 = arith.constant 0 : index
    %c0_0 = arith.constant 0 : index
    %0 = vector.load %arg1[%c0, %c0_0] : memref<8x128xf32, #tpu.memory_space<vmem>>, vector<8x128xf32>
    %c0_1 = arith.constant 0 : index
    %c0_2 = arith.constant 0 : index
    %1 = vector.load %arg2[%c0_1, %c0_2] : memref<128x128xf32, #tpu.memory_space<vmem>>, vector<128x128xf32>
    %cst = arith.constant dense<0.000000e+00> : vector<8x128xf32>
    %2 = tpu.matmul %0, %1, %cst {dimension_numbers = #tpu.dot_dimension_numbers<[1], [0], [0], [1], [0, 0, 1, 1], [], []>} : vector<8x128xf32>, vector<128x128xf32>, vector<8x128xf32> -> vector<8x128xf32>
    %cst_3 = arith.constant 0.000000e+00 : f32
    %3 = vector.broadcast %cst_3 : f32 to vector<8x128xf32>
    %4 = arith.maximumf %2, %3 : vector<8x128xf32>
    %c0_4 = arith.constant 0 : index
    %c0_5 = arith.constant 0 : index
    %5 = vector.load %arg3[%c0_4, %c0_5] : memref<8x128xf32, #tpu.memory_space<vmem>>, vector<8x128xf32>
    tpu.vector_store %arg3[%c0_4, %c0_5], %4 {strides = array<i32>} : memref<8x128xf32, #tpu.memory_space<vmem>>, vector<8x128xf32>,
    return
  }
  func.func @transform_0(%arg0: i32) -> (i32, i32) {
    %c0_i32 = arith.constant 0 : i32
    %c0_i32_0 = arith.constant 0 : i32
    return %arg0, %c0_i32 : i32, i32
  }
  func.func @transform_1(%arg0: i32) -> (i32, i32) {
    %c0_i32 = arith.constant 0 : i32
    %c0_i32_0 = arith.constant 0 : i32
    %c0_i32_1 = arith.constant 0 : i32
    return %c0_i32, %c0_i32_0 : i32, i32
  }
  func.func @transform_2(%arg0: i32) -> (i32, i32) {
    %c0_i32 = arith.constant 0 : i32
    %c0_i32_0 = arith.constant 0 : i32
    return %arg0, %c0_i32 : i32, i32
  }
}

</mosaic_0001>

<bundles_post_ra>
// kernel: tpu_custom_call.1
= control target key start
LH: loop header
LB: loop body
LE: loop exit
PB: predicated region body
PF: predicated region fallthrough
CT: control target
= control target key end

     0   :  { %7 = vsyncpa [#allocation3], 0  ;;  %s211_s0 = inlined_call_operand.hbm [shape: f32[8,128], index: 0, kind: input, shape index: {}]   ;;  %s212_s1 = inlined_call_operand.hbm [shape: f32[128,128], index: 1, kind: input, shape index: {}]   ;;  %s213_s2 = inlined_call_operand.hbm [shape: f32[8,128], index: 2, kind: output, shape index: {}]  }
   0x1   :  { %8 = vsyncpa [#allocation6], 0 }
   0x2   :  { %9 = vsyncpa [#allocation4], 0  ;;  %s15_s11 = sshll.u32 %s211_s0, 4  ;;  %s182_s12 = smov [#allocation2]   ;;  %s16_s11 = int_to_ptr.hbm [resolvable:$true] %s15_s11 }
   0x3   :  { %s17_s13 = sshll.u32 %s182_s12, 4  ;;  %s25_s16 = sshll.u32 %s212_s1, 4  ;;  %s18_s13 = int_to_ptr.vmem [resolvable:$true] %s17_s13  ;;  %s26_s16 = int_to_ptr.hbm [resolvable:$true] %s25_s16 }
   0x4   :  { %20 = dma.hbm_to_vmem [thread:$0]  %s16_s11, 128, %s18_s13, [#allocation3]  }
   0x5   :  { %s183_s17 = smov [#allocation5]   ;;  %s184_s19 = smov 128  }
   0x6   :  { %s27_s18 = sshll.u32 %s183_s17, 4  ;;  %s185_s20 = smov 8   ;;  %s28_s18 = int_to_ptr.vmem [resolvable:$true] %s27_s18 }
   0x7   :  { %33 = dma.hbm_to_vmem [thread:$0]  %s26_s16, 2048, %s28_s18, [#allocation6], %s184_s19, %s184_s19, %s185_s20  }
   0x8   :  { %176 = dma.done.wait [#allocation3], 128  }
   0x9   :  { %177 = vsyncadd [#allocation3], 4294967168 }
   0xa   :  { %178 = dma.done.wait [#allocation6], 2048  }
   0xb   :  { %179 = vsyncadd [#allocation6], 4294965248  ;;  %v58_v0 = vld [vmem:[#allocation5 + $0x78] sm:$0xff]  ;;  %v57_v1 = vld [vmem:[#allocation5 + $0x70] sm:$0xff]  ;;  %s186_s0 = smov [#allocation7]   ;;  %s88_s23 = sshll.u32 %s213_s2, 4  ;;  %s89_s23 = int_to_ptr.hbm [resolvable:$true] %s88_s23 }
   0xc   :  { %59 = vmatpush.msra.mxu0 %v58_v0  ;;  %v56_v2 = vld [vmem:[#allocation5 + $0x68] sm:$0xff]  ;;  %v55_v3 = vld [vmem:[#allocation5 + $0x60] sm:$0xff]  ;;  %v54_v4 = vld [vmem:[#allocation5 + $0x58] sm:$0xff]  ;;  %s86_s1 = sshll.u32 %s186_s0, 4  ;;  %s87_s1 = int_to_ptr.vmem [resolvable:$true] %s86_s1 }
   0xd   :  { %v53_v5 = vld [vmem:[#allocation5 + $0x50] sm:$0xff]  ;;  %v52_v6 = vld [vmem:[#allocation5 + $0x48] sm:$0xff]  ;;  %v51_v7 = vld [vmem:[#allocation5 + $0x40] sm:$0xff] }
   0xe   :  { %60 = vmatpush.msra.mxu0 %v57_v1  ;;  %v50_v8 = vld [vmem:[#allocation5 + $0x38] sm:$0xff]  ;;  %v49_v9 = vld [vmem:[#allocation5 + $0x30] sm:$0xff]  ;;  %v48_v10 = vld [vmem:[#allocation5 + $0x28] sm:$0xff] }
   0xf   :  { %v47_v11 = vld [vmem:[#allocation5 + $0x20] sm:$0xff]  ;;  %v46_v12 = vld [vmem:[#allocation5 + $0x18] sm:$0xff]  ;;  %v45_v13 = vld [vmem:[#allocation5 + $0x10] sm:$0xff] }
  0x10   :  { %61 = vmatpush.msra.mxu0 %v56_v2  ;;  %v44_v14 = vld [vmem:[#allocation5 + $0x8] sm:$0xff]  ;;  %v43_v15 = vld [vmem:[#allocation5] sm:$0xff]  ;;  %v42_v16 = vld [vmem:[#allocation2] sm:$0xff] }
  0x12   :  { %62 = vmatpush.msra.mxu0 %v55_v3 }
  0x14   :  { %63 = vmatpush.msra.mxu0 %v54_v4 }
  0x16   :  { %64 = vmatpush.msra.mxu0 %v53_v5 }
  0x18   :  { %65 = vmatpush.msra.mxu0 %v52_v6 }
  0x1a   :  { %66 = vmatpush.msra.mxu0 %v51_v7 }
  0x1c   :  { %67 = vmatpush.msra.mxu0 %v50_v8 }
  0x1e   :  { %68 = vmatpush.msra.mxu0 %v49_v9 }
  0x20   :  { %69 = vmatpush.msra.mxu0 %v48_v10 }
  0x22   :  { %70 = vmatpush.msra.mxu0 %v47_v11 }
  0x24   :  { %71 = vmatpush.msra.mxu0 %v46_v12 }
  0x26   :  { %72 = vmatpush.msra.mxu0 %v45_v13 }
  0x28   :  { %73 = vmatpush.msra.mxu0 %v44_v14 }
  0x2a   :  { %74 = vmatpush.msra.mxu0 %v43_v15 }
  0x2b   :  { %75 = vmatmul.f32.vlgmr.msra.gmra.mxu0 %v42_v16 }
  0xa8   :  { %v76_v17 = vpop.f32.mrf.mxu0 }
  0xa9   :  { %v79_v18 = vmax.f32 %v76_v17, 0.0 }
  0xab   :  { %80 = vst [vmem:[#allocation7] sm:$0xff] %v79_v18 }
  0xac   :  { %91 = dma.vmem_to_hbm [thread:$0]  %s87_s1, 128, %s89_s23, [#allocation4]  }
  0xad   :  { %180 = dma.done.wait [#allocation4], 128  }
  0xae   :  { %181 = vsyncadd [#allocation4], 4294967168 }
  0xaf   :  { %96 = vsyncpa [#allocation3], 1 }
  0xb0   :  { %97 = vsyncpa [#allocation6], 1 }
  0xb1   :  { %98 = vsyncpa [#allocation4], 1 }

</bundles_post_ra>
